<compile_context>
chip_gen: v5e
topology: v5e:2x2
jax: 0.10.0
libtpu: 0.0.40
codegen_flags: <defaults>
</compile_context>

<pallas_src>
import functools

import jax
import jax.numpy as jnp
from jax import lax
from jax.experimental import pallas as pl
from jax.experimental.pallas import tpu as pltpu


# ~16 MiB headroom under v7x's 64 MiB physical VMEM; far below v5e/v6e's 128 MiB.
_VMEM_LIMIT = 48 * 1024 * 1024


def _pick_tile(dim, target, align):
    """Largest tile <= target that divides dim and is a multiple of `align`.

    Falls back to the full dim (always a legal block) when no aligned divisor
    exists, so block shapes never violate the (8, 128) tiling rule.
    """
    if dim <= target:
        return dim
    t = (target // align) * align
    while t >= align:
        if dim % t == 0:
            return t
        t -= align
    return dim


# ----------------------------------------------------------------------------
# Tiled linear projection kernel: y = x @ W.T  (PyTorch nn.Linear, bias=False)
# W is passed as-is (N, K); the contraction dims are given to dot_general so
# there is no HBM transpose pass and no in-kernel `.T`.
# ----------------------------------------------------------------------------
def _matmul_kernel(x_ref, w_ref, o_ref, acc_ref):
    @pl.when(pl.program_id(2) == 0)
    def _():
        acc_ref[...] = jnp.zeros_like(acc_ref)

    # x block (tm, tk) bf16, w block (tn, tk) bf16 -> (tm, tn) f32 accumulate.
    acc_ref[...] += lax.dot_general(
        x_ref[...], w_ref[...], (((1,), (1,)), ((), ())),
        preferred_element_type=jnp.float32,
    )

    @pl.when(pl.program_id(2) == pl.num_programs(2) - 1)
    def _():
        o_ref[...] = acc_ref[...].astype(o_ref.dtype)


def linear(x, w, *, out_dtype=jnp.float32, tm=512, tn=512, tk=512):
    """y = x @ w.T with a tiled, software-pipelined Pallas matmul (bf16 MXU)."""
    x = x.astype(jnp.bfloat16)
    w = w.astype(jnp.bfloat16)
    M, K = x.shape
    N = w.shape[0]

    tm = _pick_tile(M, tm, 8)     # sublane dim of x and out blocks
    tn = _pick_tile(N, tn, 128)   # lane dim of out block, sublane of w block
    tk = _pick_tile(K, tk, 128)   # lane dim of x and w blocks

    return pl.pallas_call(
        _matmul_kernel,
        out_shape=jax.ShapeDtypeStruct((M, N), out_dtype),
        grid=(M // tm, N // tn, K // tk),
        in_specs=[
            pl.BlockSpec((tm, tk), lambda i, j, k: (i, k)),
            pl.BlockSpec((tn, tk), lambda i, j, k: (j, k)),
        ],
        out_specs=pl.BlockSpec((tm, tn), lambda i, j, k: (i, j)),
        scratch_shapes=[pltpu.VMEM((tm, tn), jnp.float32)],
        compiler_params=pltpu.CompilerParams(
            dimension_semantics=("parallel", "parallel", "arbitrary"),
            vmem_limit_bytes=_VMEM_LIMIT,
        ),
    )(x, w)


# ----------------------------------------------------------------------------
# Sparse attention kernel: one (batch/head, query-tile) block per grid step.
#   scores = q @ k^T           (q already carries the 1/sqrt(Dh) scale)
#   keep elements >= k-th largest per row (k = int(S * sparsity)), mask to -inf
#   softmax, out = weights @ v
# ----------------------------------------------------------------------------
def _attn_kernel(q_ref, k_ref, v_ref, o_ref, w_ref=None, *, num_keep,
                 apply_sparse, n_iters):
    q = q_ref[...]          # (tq, Dh) bf16, pre-scaled via the projection weight
    k = k_ref[...]          # (S, Dh)  bf16
    v = v_ref[...]          # (S, Dh)  bf16

    # Contract on the last dims: no in-kernel transpose of k.
    scores = lax.dot_general(
        q, k, (((1,), (1,)), ((), ())), preferred_element_type=jnp.float32
    )  # (tq, S) f32

    if apply_sparse:
        # Bisection for the per-row k-th largest value.  The count-reduce is an
        # MXU matmul against a ones (S, 1) vector (hoisted out of the loop) so
        # the loop does not serialize on the XLU; the mask stays bf16 (exact
        # for 0/1 values, integer-exact accumulation for S < 2^24).
        ones = jnp.ones((k.shape[0], 1), dtype=jnp.bfloat16)
        row_min = jnp.min(scores, axis=-1, keepdims=True)
        row_max = jnp.max(scores, axis=-1, keepdims=True)

        def body(_, carry):
            lo, hi = carry
            mid = 0.5 * (lo + hi)
            mask = (scores >= mid).astype(jnp.bfloat16)
            cnt = lax.dot_general(
                mask, ones, (((1,), (0,)), ((), ())),
                preferred_element_type=jnp.float32,
            )  # (tq, 1)
            ge = cnt >= num_keep
            lo = jnp.where(ge, mid, lo)
            hi = jnp.where(ge, hi, mid)
            return lo, hi

        thr, _ = lax.fori_loop(0, n_iters, body, (row_min, row_max))
        scores = jnp.where(scores >= thr, scores, -jnp.inf)

    m = jnp.max(scores, axis=-1, keepdims=True)
    e = jnp.exp(scores - m)
    denom = jnp.sum(e, axis=-1, keepdims=True)
    p = e * pl.reciprocal(denom, approx=True)   # EUP reciprocal (free slot)

    if w_ref is not None:
        w_ref[...] = p.astype(w_ref.dtype)      # bf16 weight writeback
    o_ref[...] = lax.dot_general(
        p.astype(jnp.bfloat16), v, (((1,), (0,)), ((), ())),
        preferred_element_type=jnp.float32,
    ).astype(o_ref.dtype)


# ----------------------------------------------------------------------------
# Full module forward
# ----------------------------------------------------------------------------
def sparse_mha(query, key, value, wq, wk, wv, wo, *, num_heads, sparsity,
               need_weights=True, tq_target=128, topk_iters=20):
    B, T, E = query.shape
    S = key.shape[1]
    H = num_heads
    assert E % H == 0
    Dh = E // H
    bf16 = jnp.bfloat16

    scale = 1.0 / (Dh ** 0.5)
    wq_s = wq * scale            # fold the softmax scale into the q projection

    q_in = query.reshape(B * T, E)
    k_in = key.reshape(B * S, E)
    v_in = value.reshape(B * S, E)

    # --- Q/K/V projections; fused into one matmul when inputs are shared -----
    # (In a real module the concatenated weights would be built once at init.)
    if (query is key) and (key is value):
        qkv = linear(q_in, jnp.concatenate([wq_s, wk, wv], axis=0),
                     out_dtype=bf16)
        q2, k2, v2 = qkv[:, :E], qkv[:, E:2 * E], qkv[:, 2 * E:]
    elif key is value:
        q2 = linear(q_in, wq_s, out_dtype=bf16)
        kv = linear(k_in, jnp.concatenate([wk, wv], axis=0), out_dtype=bf16)
        k2, v2 = kv[:, :E], kv[:, E:]
    else:
        q2 = linear(q_in, wq_s, out_dtype=bf16)
        k2 = linear(k_in, wk, out_dtype=bf16)
        v2 = linear(v_in, wv, out_dtype=bf16)

    num_keep = int(S * sparsity) if sparsity < 1.0 else S
    apply_sparse = (sparsity < 1.0) and (0 < num_keep < S)
    tq = _pick_tile(T, tq_target, 8)

    kernel = functools.partial(
        _attn_kernel, num_keep=num_keep, apply_sparse=apply_sparse,
        n_iters=topk_iters,
    )

    # Direct path: fold the head split/merge into BlockSpec index_maps when the
    # head dim is lane-aligned (Dh % 128 == 0) and T/S are sublane-aligned.
    direct = (Dh % 128 == 0) and (T % 8 == 0) and (S % 8 == 0)

    if direct:
        n_qt = T // tq
        grid = (B, H, n_qt)
        in_specs = [
            pl.BlockSpec((tq, Dh), lambda b, h, j: (b * n_qt + j, h)),
            pl.BlockSpec((S, Dh), lambda b, h, j: (b, h)),
            pl.BlockSpec((S, Dh), lambda b, h, j: (b, h)),
        ]
        o_shape = jax.ShapeDtypeStruct((B * T, E), bf16)
        o_spec = pl.BlockSpec((tq, Dh), lambda b, h, j: (b * n_qt + j, h))
        w_shape = jax.ShapeDtypeStruct((B, H, T, S), bf16)
        w_spec = pl.BlockSpec((None, None, tq, S), lambda b, h, j: (b, h, j, 0))
        sems = ("parallel", "parallel", "parallel")
        operands = (q2, k2, v2)
    else:
        def split_heads(x2, L):
            return (x2.reshape(B, L, H, Dh).transpose(0, 2, 1, 3)
                    .reshape(B * H, L, Dh))

        qh, kh, vh = split_heads(q2, T), split_heads(k2, S), split_heads(v2, S)
        grid = (B * H, T // tq)
        in_specs = [
            pl.BlockSpec((None, tq, Dh), lambda i, j: (i, j, 0)),
            pl.BlockSpec((None, S, Dh), lambda i, j: (i, 0, 0)),
            pl.BlockSpec((None, S, Dh), lambda i, j: (i, 0, 0)),
        ]
        o_shape = jax.ShapeDtypeStruct((B * H, T, Dh), bf16)
        o_spec = pl.BlockSpec((None, tq, Dh), lambda i, j: (i, j, 0))
        w_shape = jax.ShapeDtypeStruct((B * H, T, S), bf16)
        w_spec = pl.BlockSpec((None, tq, S), lambda i, j: (i, j, 0))
        sems = ("parallel", "parallel")
        operands = (qh, kh, vh)

    if need_weights:
        out_shape, out_specs = (o_shape, w_shape), (o_spec, w_spec)
    else:
        out_shape, out_specs = o_shape, o_spec

    res = pl.pallas_call(
        kernel,
        out_shape=out_shape,
        grid=grid,
        in_specs=in_specs,
        out_specs=out_specs,
        compiler_params=pltpu.CompilerParams(
            dimension_semantics=sems,
            vmem_limit_bytes=_VMEM_LIMIT,
        ),
    )(*operands)

    if need_weights:
        attn_out, attn_w = res
    else:
        attn_out, attn_w = res, None

    if direct:
        merged = attn_out                               # already (B*T, E)
    else:
        merged = (attn_out.reshape(B, H, T, Dh).transpose(0, 2, 1, 3)
                  .reshape(B * T, E))
        if attn_w is not None:
            attn_w = attn_w.reshape(B, H, T, S)

    out = linear(merged, wo, out_dtype=jnp.float32).reshape(B, T, E)
    return out, attn_w


# ----------------------------------------------------------------------------
# Pure-JAX reference (mirrors the kernel's bf16-in / f32-accumulate precision
# so the top-k kept set is selected on the same score values)
# ----------------------------------------------------------------------------
def ref_sparse_mha(query, key, value, wq, wk, wv, wo, *, num_heads, sparsity):
    B, T, E = query.shape
    S = key.shape[1]
    H = num_heads
    Dh = E // H
    bf16 = jnp.bfloat16
    scale = 1.0 / (Dh ** 0.5)

    def lin(x, w):
        y = jnp.einsum("blk,ok->blo", x.astype(bf16), w.astype(bf16),
                       preferred_element_type=jnp.float32)
        return y.astype(bf16)

    q = lin(query, wq * scale).reshape(B, T, H, Dh).transpose(0, 2, 1, 3)
    k = lin(key, wk).reshape(B, S, H, Dh).transpose(0, 2, 1, 3)
    v = lin(value, wv).reshape(B, S, H, Dh).transpose(0, 2, 1, 3)

    scores = jnp.einsum("bhtd,bhsd->bhts", q, k,
                        preferred_element_type=jnp.float32)
    if sparsity < 1.0:
        num_keep = int(S * sparsity)
        if 0 < num_keep < S:
            thr = lax.top_k(scores, num_keep)[0][..., -1:]
            scores = jnp.where(scores >= thr, scores, -jnp.inf)
    w = jax.nn.softmax(scores, axis=-1)
    o = jnp.einsum("bhts,bhsd->bhtd", w.astype(bf16), v,
                   preferred_element_type=jnp.float32).astype(bf16)
    o = o.transpose(0, 2, 1, 3).reshape(B * T, E)
    out = jnp.einsum("me,oe->mo", o, wo.astype(bf16),
                     preferred_element_type=jnp.float32).reshape(B, T, E)
    return out, w


if __name__ == "__main__":
    B, T, S, E, H = 2, 8, 8, 32, 4
    sparsity = 0.5

    root = jax.random.PRNGKey(0)
    k1, k2, k3, k4, k5, k6, k7 = jax.random.split(root, 7)

    # Deterministic nn.Linear-style init: U(-1/sqrt(E), 1/sqrt(E)).
    bound = 1.0 / (E ** 0.5)
    wq = jax.random.uniform(k1, (E, E), jnp.float32, -bound, bound)
    wk = jax.random.uniform(k2, (E, E), jnp.float32, -bound, bound)
    wv = jax.random.uniform(k3, (E, E), jnp.float32, -bound, bound)
    wo = jax.random.uniform(k4, (E, E), jnp.float32, -bound, bound)

    query = jax.random.normal(k5, (B, T, E), jnp.float32)
    key = jax.random.normal(k6, (B, S, E), jnp.float32)
    value = jax.random.normal(k7, (B, S, E), jnp.float32)

    out, attn_w = sparse_mha(
        query, key, value, wq, wk, wv, wo,
        num_heads=H, sparsity=sparsity, need_weights=True,
    )
    out, attn_w = jax.block_until_ready((out, attn_w))

    ref_out, ref_w = ref_sparse_mha(
        query, key, value, wq, wk, wv, wo, num_heads=H, sparsity=sparsity
    )

    assert out.shape == (B, T, E) and out.dtype == jnp.float32
    assert attn_w.shape == (B, H, T, S)
    # Tolerances account for bf16 MXU inputs, the bf16 attn-weight writeback,
    # the approx (EUP) reciprocal in the softmax and the bisection threshold.
    assert jnp.allclose(out, ref_out, atol=3e-2, rtol=3e-2)
    assert jnp.allclose(attn_w.astype(jnp.float32), ref_w, atol=2e-2, rtol=2e-2)

    print("KERNEL_OK")
</pallas_src>

<mosaic_0001>
module attributes {stable_mosaic.version = 11 : i64} {
  func.func @_matmul_kernel(%arg0: i32, %arg1: i32, %arg2: i32, %arg3: memref<16x32xbf16, #tpu.memory_space<vmem>>, %arg4: memref<32x32xbf16, #tpu.memory_space<vmem>>, %arg5: memref<16x32xbf16, #tpu.memory_space<vmem>>, %arg6: memref<16x32xf32, #tpu.memory_space<vmem>>) attributes {dimension_semantics = [#tpu.dimension_semantics<parallel>, #tpu.dimension_semantics<parallel>, #tpu.dimension_semantics<arbitrary>], iteration_bounds = array<i64: 1, 1, 1>, scalar_prefetch = 0 : i64, scratch_operands = 1 : i64, tpu.core_type = #tpu.core_type<tc>, window_params = [{transform_indices = @transform_0, window_bounds = array<i64: 16, 32>}, {transform_indices = @transform_1, window_bounds = array<i64: 32, 32>}, {transform_indices = @transform_2, window_bounds = array<i64: 16, 32>}]} {
    %c0_i32 = arith.constant 0 : i32
    %0 = arith.cmpi eq, %arg2, %c0_i32 : i32
    %1 = arith.extui %0 : i1 to i32
    %c0_i32_0 = arith.constant 0 : i32
    %2 = arith.cmpi ne, %1, %c0_i32_0 : i32
    scf.if %2 {
      %cst_10 = arith.constant 0.000000e+00 : f32
      %12 = vector.broadcast %cst_10 : f32 to vector<16x32xf32>
      %c0_11 = arith.constant 0 : index
      %c0_12 = arith.constant 0 : index
      %13 = vector.load %arg6[%c0_11, %c0_12] : memref<16x32xf32, #tpu.memory_space<vmem>>, vector<16x32xf32>
      tpu.vector_store %arg6[%c0_11, %c0_12], %12 {strides = array<i32>} : memref<16x32xf32, #tpu.memory_space<vmem>>, vector<16x32xf32>,
    } else {
    }
    %c0 = arith.constant 0 : index
    %c0_1 = arith.constant 0 : index
    %3 = vector.load %arg6[%c0, %c0_1] : memref<16x32xf32, #tpu.memory_space<vmem>>, vector<16x32xf32>
    %c0_2 = arith.constant 0 : index
    %c0_3 = arith.constant 0 : index
    %4 = vector.load %arg3[%c0_2, %c0_3] : memref<16x32xbf16, #tpu.memory_space<vmem>>, vector<16x32xbf16>
    %c0_4 = arith.constant 0 : index
    %c0_5 = arith.constant 0 : index
    %5 = vector.load %arg4[%c0_4, %c0_5] : memref<32x32xbf16, #tpu.memory_space<vmem>>, vector<32x32xbf16>
    %cst = arith.constant dense<0.000000e+00> : vector<16x32xf32>
    %6 = tpu.matmul %4, %5, %cst {dimension_numbers = #tpu.dot_dimension_numbers<[1], [1], [0], [0], [0, 0, 1, 0], [], []>} : vector<16x32xbf16>, vector<32x32xbf16>, vector<16x32xf32> -> vector<16x32xf32>
    %7 = arith.addf %3, %6 : vector<16x32xf32>
    %c0_6 = arith.constant 0 : index
    %c0_7 = arith.constant 0 : index
    %8 = vector.load %arg6[%c0_6, %c0_7] : memref<16x32xf32, #tpu.memory_space<vmem>>, vector<16x32xf32>
    tpu.vector_store %arg6[%c0_6, %c0_7], %7 {strides = array<i32>} : memref<16x32xf32, #tpu.memory_space<vmem>>, vector<16x32xf32>,
    %c0_i32_8 = arith.constant 0 : i32
    %9 = arith.cmpi eq, %arg2, %c0_i32_8 : i32
    %10 = arith.extui %9 : i1 to i32
    %c0_i32_9 = arith.constant 0 : i32
    %11 = arith.cmpi ne, %10, %c0_i32_9 : i32
    scf.if %11 {
      %c0_10 = arith.constant 0 : index
      %c0_11 = arith.constant 0 : index
      %12 = vector.load %arg6[%c0_10, %c0_11] : memref<16x32xf32, #tpu.memory_space<vmem>>, vector<16x32xf32>
      %13 = arith.truncf %12 : vector<16x32xf32> to vector<16x32xbf16>
      %c0_12 = arith.constant 0 : index
      %c0_13 = arith.constant 0 : index
      %14 = vector.load %arg5[%c0_12, %c0_13] : memref<16x32xbf16, #tpu.memory_space<vmem>>, vector<16x32xbf16>
      tpu.vector_store %arg5[%c0_12, %c0_13], %13 {strides = array<i32>} : memref<16x32xbf16, #tpu.memory_space<vmem>>, vector<16x32xbf16>,
    } else {
    }
    return
  }
  func.func @transform_0(%arg0: i32, %arg1: i32, %arg2: i32) -> (i32, i32) {
    %c0_i32 = arith.constant 0 : i32
    return %arg0, %arg2 : i32, i32
  }
  func.func @transform_1(%arg0: i32, %arg1: i32, %arg2: i32) -> (i32, i32) {
    %c0_i32 = arith.constant 0 : i32
    return %arg1, %arg2 : i32, i32
  }
  func.func @transform_2(%arg0: i32, %arg1: i32, %arg2: i32) -> (i32, i32) {
    %c0_i32 = arith.constant 0 : i32
    return %arg0, %arg1 : i32, i32
  }
}

</mosaic_0001>

<bundles_post_ra>
// kernel: tpu_custom_call.1
= control target key start
LH: loop header
LB: loop body
LE: loop exit
PB: predicated region body
PF: predicated region fallthrough
CT: control target
= control target key end

     0   :  { %7 = vsyncpa [#allocation4], 0  ;;  %s279_s0 = inlined_call_operand.hbm [shape: bf16[16,32], index: 0, kind: input, shape index: {}]   ;;  %s280_s1 = inlined_call_operand.hbm [shape: bf16[32,32], index: 1, kind: input, shape index: {}]   ;;  %s281_s2 = inlined_call_operand.hbm [shape: bf16[16,32], index: 2, kind: output, shape index: {}]  }
   0x1   :  { %8 = vsyncpa [#allocation7], 0 }
   0x2   :  { %9 = vsyncpa [#allocation5], 0  ;;  %s14_s11 = sshll.u32 %s279_s0, 4  ;;  %s233_s12 = smov [#allocation3]   ;;  %s15_s11 = int_to_ptr.hbm [resolvable:$true] %s14_s11 }
   0x3   :  { %s16_s13 = sshll.u32 %s233_s12, 4  ;;  %s27_s16 = sshll.u32 %s280_s1, 4  ;;  %s17_s13 = int_to_ptr.vmem [resolvable:$true] %s16_s13  ;;  %s28_s16 = int_to_ptr.hbm [resolvable:$true] %s27_s16 }
   0x4   :  { %s234_s17 = smov 64   ;;  %s235_s18 = smov 4  }
   0x5   :  { %22 = dma.hbm_to_vmem [thread:$0]  %s15_s11, 128, %s17_s13, [#allocation4], %s234_s17, %s234_s17, %s235_s18  }
   0x6   :  { %s236_s19 = smov [#allocation6]  }
   0x7   :  { %s29_s20 = sshll.u32 %s236_s19, 4  ;;  %s30_s20 = int_to_ptr.vmem [resolvable:$true] %s29_s20 }
   0x8   :  { %35 = dma.hbm_to_vmem [thread:$0]  %s28_s16, 256, %s30_s20, [#allocation7], %s234_s17, %s234_s17, %s235_s18  }
   0x9   :  { %227 = dma.done.wait [#allocation4], 128  }
   0xa   :  { %228 = vsyncadd [#allocation4], 4294967168 }
   0xb   :  { %229 = dma.done.wait [#allocation7], 256  }
   0xc   :  { %230 = vsyncadd [#allocation7], 4294967040  ;;  %vm49_vm0 = vcmask 261120   ;;  %v237_v0 = vmov 0.0   ;;  %v148_v1 = vld [vmem:[#allocation6 + $0x8] sm:$0xff]  ;;  %v147_v3 = vld [vmem:[#allocation6] sm:$0xff] }
   0xd   :  { %50 = vst.msk [vmem:[#allocation2] sm:$0xff] %vm49_vm0, %v237_v0  ;;  %v83_v2 = vsel %vm49_vm0, %v148_v1, 0  ;;  %v80_v4 = vsel %vm49_vm0, %v147_v3, 0  ;;  %v146_v5 = vld [vmem:[#allocation3] sm:$0xff]  ;;  %vm110_vm1 = vcmask 257024   ;;  %s238_s0 = smov [#allocation8]  }
   0xe   :  { %51 = vst.msk [vmem:[#allocation2 + $0x8] sm:$0xff] %vm49_vm0, %v237_v0  ;;  %91 = vmatpush.bf16.xpose.msra.mxu0 %v83_v2  ;;  %s117_s1 = sshll.u32 %s238_s0, 4  ;;  %s119_s23 = sshll.u32 %s281_s2, 4  ;;  %s118_s1 = int_to_ptr.vmem [resolvable:$true] %s117_s1  ;;  %s120_s23 = int_to_ptr.hbm [resolvable:$true] %s119_s23 }
  0x14   :  { %v52_v6 = vld [vmem:[#allocation2] sm:$0xff] }
  0x15   :  { %v53_v9 = vld [vmem:[#allocation2 + $0x8] sm:$0xff] }
  0x16   :  { %92 = vmatpush.bf16.xpose.msra.mxu0 %v80_v4 }
  0x1d   :  { %145 = vmatmul.msk.bf16.vlgmr.msra.gmra.mxu0 %vm49_vm0, %v146_v5 }
  0x9a   :  { %v94_v7 = vpop.f32.mrf.mxu0 }
  0x9b   :  { %v99_v8 = vadd.f32 %v94_v7, %v52_v6 }
  0x9d   :  { %101 = vst.msk [vmem:[#allocation2] sm:$0xff] %vm49_vm0, %v99_v8 }
  0xa2   :  { %v96_v10 = vpop.f32.mrf.mxu0 }
  0xa3   :  { %v100_v11 = vadd.f32 %v96_v10, %v53_v9 }
  0xa4   :  { %v106_v12 = vld [vmem:[#allocation2] sm:$0xff] }
  0xa5   :  { %102 = vst.msk [vmem:[#allocation2 + $0x8] sm:$0xff] %vm49_vm0, %v100_v11  ;;  %v108_v13 = vpack.c.bf16 %v106_v12, %v106_v12 }
  0xa7   :  { %111 = vst.msk [vmem:[#allocation8] sm:$0xf] %vm110_vm1, %v108_v13 }
  0xac   :  { %v107_v14 = vld [vmem:[#allocation2 + $0x8] sm:$0xff] }
  0xad   :  { %v109_v15 = vpack.c.bf16 %v107_v14, %v107_v14 }
  0xaf   :  { %112 = vst.msk [vmem:[#allocation8 + $0x4] sm:$0xf] %vm110_vm1, %v109_v15 }
  0xb0   :  { %125 = dma.vmem_to_hbm [thread:$0]  %s118_s1, 128, %s120_s23, [#allocation5], %s234_s17, %s234_s17, %s235_s18  }
  0xb1   :  { %231 = dma.done.wait [#allocation5], 128  }
  0xb2   :  { %232 = vsyncadd [#allocation5], 4294967168 }
  0xb3   :  { %130 = vsyncpa [#allocation4], 1 }
  0xb4   :  { %131 = vsyncpa [#allocation7], 1 }
  0xb5   :  { %132 = vsyncpa [#allocation5], 1 }

</bundles_post_ra>
